<compile_context>
chip_gen: v6e
topology: v6e:2x2x1
jax: 0.10.0
libtpu: 0.0.40
codegen_flags: <defaults>
</compile_context>

<pallas_src>
import functools

import jax
import jax.numpy as jnp
from jax.experimental import pallas as pl
from jax.experimental.pallas import tpu as pltpu

# --- module hyper-parameters (small, consistent with the __init__ signature) ---
MEL_DIM   = 32     # mel_dim
TEXT_DIM  = 16     # text_dim
OUT_DIM   = 64     # out_dim
SPK_DIM   = 192    # external speaker-embedding width (proj in_features: mel+128+192+text)
COND_FEAT = 80     # ECAPA_TDNN input channels
ENC_HID   = 256    # stand-in hidden width for the speaker encoder
ENC_OUT   = 128    # ECAPA_TDNN lin_neurons

PACK = 2                       # tokens packed per 128-lane output row
assert PACK * OUT_DIM == 128, "packing factor chosen so the output is lane-dense"

# Tile sizes (tokens).  512 tokens/tile is the review's starting point; keep
# per-step working set ~1-2 MB so it fits comfortably inside v7x's 32 MiB scoped
# VMEM (sweep 512-2048 on v5e/v6e).  N must be divisible by the tile in this
# demo; production code should pad N.
PROJ_TILE_TOKENS = 512
ENC_TILE_TOKENS  = 256


# ----------------------------- Pallas kernels ---------------------------------
def _spk_encoder_kernel(cond_ref, w1_ref, b1_ref, w2f_ref, b2f_ref,
                        out_ref, acc_ref, *, inv_n):
    """Tiled-over-time speaker encoder; emits the folded, packed cond_bias row."""
    n = pl.program_id(1)

    @pl.when(n == 0)
    def _():
        acc_ref[...] = jnp.zeros_like(acc_ref)

    c = cond_ref[0]                                               # (tile, 80) bf16
    h = jnp.dot(c, w1_ref[...], preferred_element_type=jnp.float32) + b1_ref[...]
    h = jnp.maximum(h, 0.0)                                       # f32 elementwise
    acc_ref[...] += jnp.sum(h, axis=0, keepdims=True)             # running sum (1, 256)

    @pl.when(n == pl.num_programs(1) - 1)
    def _():
        pooled = (acc_ref[...] * inv_n).astype(jnp.bfloat16)      # mean over time
        cb = jnp.dot(pooled, w2f_ref[...],
                     preferred_element_type=jnp.float32) + b2f_ref[...]
        out_ref[0] = cb                                           # (1, 128) f32


def _proj_kernel(x_ref, t_ref, s_ref, cb_ref, wx_ref, wt_ref, ws_ref, out_ref):
    """Fused split-weight projection on token-pair-packed activations."""
    acc = jnp.dot(x_ref[0], wx_ref[...], preferred_element_type=jnp.float32)
    acc = acc + jnp.dot(t_ref[0], wt_ref[...], preferred_element_type=jnp.float32)
    acc = acc + jnp.dot(s_ref[0], ws_ref[...], preferred_element_type=jnp.float32)
    acc = acc + cb_ref[0]                                         # (1,128) per-batch row
    out_ref[0] = acc.astype(out_ref.dtype)                        # dense 128-lane store


def _proj_nospk_kernel(x_ref, t_ref, cb_ref, wx_ref, wt_ref, out_ref):
    """drop_audio_cond path: spk == 0, its matmul is dropped entirely."""
    acc = jnp.dot(x_ref[0], wx_ref[...], preferred_element_type=jnp.float32)
    acc = acc + jnp.dot(t_ref[0], wt_ref[...], preferred_element_type=jnp.float32)
    acc = acc + cb_ref[0]
    out_ref[0] = acc.astype(out_ref.dtype)


# ------------------------------ host wrappers ----------------------------------
def spk_encoder_cond_bias(cond_bf16, kp):
    """cond (B, N, 80) bf16 -> folded+packed cond_bias (B, 1, 128) f32."""
    B, N, _ = cond_bf16.shape
    tn = min(ENC_TILE_TOKENS, N)
    assert N % tn == 0, "demo requires N divisible by the encoder tile (pad in prod)"
    lanes = PACK * OUT_DIM
    kernel = functools.partial(_spk_encoder_kernel, inv_n=1.0 / N)
    return pl.pallas_call(
        kernel,
        out_shape=jax.ShapeDtypeStruct((B, 1, lanes), jnp.float32),
        grid_spec=pltpu.PrefetchScalarGridSpec(
            num_scalar_prefetch=0,
            grid=(B, N // tn),
            in_specs=[
                pl.BlockSpec((1, tn, COND_FEAT), lambda b, n: (b, n, 0)),
                pl.BlockSpec((COND_FEAT, ENC_HID), lambda b, n: (0, 0)),
                pl.BlockSpec((1, ENC_HID), lambda b, n: (0, 0)),
                pl.BlockSpec((ENC_HID, lanes), lambda b, n: (0, 0)),
                pl.BlockSpec((1, lanes), lambda b, n: (0, 0)),
            ],
            out_specs=pl.BlockSpec((1, 1, lanes), lambda b, n: (b, 0, 0)),
            scratch_shapes=[pltpu.VMEM((1, ENC_HID), jnp.float32)],
        ),
        compiler_params=pltpu.CompilerParams(
            dimension_semantics=("parallel", "arbitrary")),
    )(cond_bf16, kp["enc_w1"], kp["enc_b1"], kp["w2f_p"], kp["b2f_p"])


def proj_packed(x_p, t_p, s_p, cond_bias, kp, *, out_dtype=jnp.float32):
    """Packed activations (B, N/2, 2D) -> packed output (B, N/2, 128)."""
    B, NP, _ = x_p.shape
    tp = min(PROJ_TILE_TOKENS // PACK, NP)          # tile in packed rows
    assert NP % tp == 0, "demo requires N divisible by the proj tile (pad in prod)"
    lanes = PACK * OUT_DIM

    if s_p is not None:
        kernel = _proj_kernel
        operands = (x_p, t_p, s_p, cond_bias, kp["wx_p"], kp["wt_p"], kp["ws_p"])
        in_specs = [
            pl.BlockSpec((1, tp, PACK * MEL_DIM), lambda b, n: (b, n, 0)),
            pl.BlockSpec((1, tp, PACK * TEXT_DIM), lambda b, n: (b, n, 0)),
            pl.BlockSpec((1, tp, PACK * SPK_DIM), lambda b, n: (b, n, 0)),
            pl.BlockSpec((1, 1, lanes), lambda b, n: (b, 0, 0)),
            pl.BlockSpec((PACK * MEL_DIM, lanes), lambda b, n: (0, 0)),
            pl.BlockSpec((PACK * TEXT_DIM, lanes), lambda b, n: (0, 0)),
            pl.BlockSpec((PACK * SPK_DIM, lanes), lambda b, n: (0, 0)),
        ]
    else:
        kernel = _proj_nospk_kernel
        operands = (x_p, t_p, cond_bias, kp["wx_p"], kp["wt_p"])
        in_specs = [
            pl.BlockSpec((1, tp, PACK * MEL_DIM), lambda b, n: (b, n, 0)),
            pl.BlockSpec((1, tp, PACK * TEXT_DIM), lambda b, n: (b, n, 0)),
            pl.BlockSpec((1, 1, lanes), lambda b, n: (b, 0, 0)),
            pl.BlockSpec((PACK * MEL_DIM, lanes), lambda b, n: (0, 0)),
            pl.BlockSpec((PACK * TEXT_DIM, lanes), lambda b, n: (0, 0)),
        ]

    return pl.pallas_call(
        kernel,
        out_shape=jax.ShapeDtypeStruct((B, NP, lanes), out_dtype),
        grid_spec=pltpu.PrefetchScalarGridSpec(
            num_scalar_prefetch=0,
            grid=(B, NP // tp),
            in_specs=in_specs,
            out_specs=pl.BlockSpec((1, tp, lanes), lambda b, n: (b, n, 0)),
        ),
        compiler_params=pltpu.CompilerParams(
            dimension_semantics=("parallel", "parallel")),
    )(*operands)


def input_embedding_forward(x, spk, cond, text_embed, params, drop_audio_cond=False):
    """Mirrors InputEmbedding.forward."""
    B, N, _ = x.shape
    assert N % PACK == 0
    kp = params["kernel"]
    bf16 = jnp.bfloat16

    # bf16 cast at the pallas_call boundary + free row-major token-pair packing.
    x_p = x.astype(bf16).reshape(B, N // PACK, PACK * MEL_DIM)
    t_p = text_embed.astype(bf16).reshape(B, N // PACK, PACK * TEXT_DIM)

    if drop_audio_cond:
        # cond := 0  ->  encoder output is the constant ReLU(b1) pooled over time;
        # spk  := 0  ->  its matmul contributes nothing and is skipped entirely.
        # No HBM zeros are materialized and the encoder kernel is not launched.
        pooled0 = jnp.maximum(kp["enc_b1"], 0.0).astype(bf16)            # (1, 256)
        cb0 = jnp.dot(pooled0, kp["w2f_p"],
                      preferred_element_type=jnp.float32) + kp["b2f_p"]  # (1, 128)
        cond_bias = jnp.broadcast_to(cb0[None], (B, 1, PACK * OUT_DIM))
        out_p = proj_packed(x_p, t_p, None, cond_bias, kp)
    else:
        s_p = spk.astype(bf16).reshape(B, N // PACK, PACK * SPK_DIM)
        cond_bias = spk_encoder_cond_bias(cond.astype(bf16), kp)         # (B, 1, 128)
        out_p = proj_packed(x_p, t_p, s_p, cond_bias, kp)

    return out_p.reshape(B, N, OUT_DIM)                                  # free reshape


# -------------------------- deterministic parameter init ------------------------
def _block_diag2(w):
    """[[w, 0], [0, w]] — packs two tokens per output row via one matmul."""
    z = jnp.zeros_like(w)
    top = jnp.concatenate([w, z], axis=1)
    bot = jnp.concatenate([z, w], axis=1)
    return jnp.concatenate([top, bot], axis=0)


def prepare_params(raw):
    """Derive folded / packed / bf16 kernel weights from the PyTorch-style params."""
    o0, o1, o2 = MEL_DIM, MEL_DIM + ENC_OUT, MEL_DIM + ENC_OUT + TEXT_DIM
    w_proj, bias = raw["w_proj"], raw["bias"]
    w_x = jnp.transpose(w_proj[:, :o0])         # (mel, out)
    w_c = jnp.transpose(w_proj[:, o0:o1])       # (128, out)
    w_t = jnp.transpose(w_proj[:, o1:o2])       # (text, out)
    w_s = jnp.transpose(w_proj[:, o2:])         # (192, out)

    # Fold the cond contribution and the proj bias into the encoder's last linear.
    w2f = raw["enc_w2"] @ w_c                                   # (256, out)
    b2f = raw["enc_b2"] @ w_c + bias[None, :]                   # (1, out)

    bf16, f32 = jnp.bfloat16, jnp.float32
    return {
        "wx_p": _block_diag2(w_x).astype(bf16),                 # (2*mel, 128)
        "wt_p": _block_diag2(w_t).astype(bf16),                 # (2*text, 128)
        "ws_p": _block_diag2(w_s).astype(bf16),                 # (2*192, 128)
        "enc_w1": raw["enc_w1"].astype(bf16),                   # (80, 256)
        "enc_b1": raw["enc_b1"].astype(f32),                    # (1, 256)
        "w2f_p": jnp.concatenate([w2f, w2f], axis=1).astype(bf16),   # (256, 128)
        "b2f_p": jnp.concatenate([b2f, b2f], axis=1).astype(f32),    # (1, 128)
    }


def init_params(key):
    ks = jax.random.split(key, 6)
    in_total = MEL_DIM + ENC_OUT + TEXT_DIM + SPK_DIM   # nn.Linear in_features
    raw = {
        # proj weight stored PyTorch-style (out, in); concat order (x, cond, text, spk)
        "w_proj": 0.02 * jax.random.normal(ks[0], (OUT_DIM, in_total), jnp.float32),
        "bias":   0.01 * jax.random.normal(ks[1], (OUT_DIM,), jnp.float32),
        "enc_w1": 0.05 * jax.random.normal(ks[2], (COND_FEAT, ENC_HID), jnp.float32),
        "enc_b1": 0.01 * jax.random.normal(ks[3], (1, ENC_HID), jnp.float32),
        "enc_w2": 0.05 * jax.random.normal(ks[4], (ENC_HID, ENC_OUT), jnp.float32),
        "enc_b2": 0.01 * jax.random.normal(ks[5], (1, ENC_OUT), jnp.float32),
    }
    return {"raw": raw, "kernel": prepare_params(raw)}


def reference_forward(x, spk, cond, text_embed, raw, drop_audio_cond=False):
    """Pure-JAX f32 reference with the naive (unfolded, unpacked) formulation."""
    if drop_audio_cond:
        cond = jnp.zeros_like(cond)
        spk = jnp.zeros_like(spk)
    h = jnp.maximum(cond @ raw["enc_w1"] + raw["enc_b1"], 0.0)
    emb = h.mean(axis=1) @ raw["enc_w2"] + raw["enc_b2"]                 # (B, 128)
    cond_bn = jnp.repeat(emb[:, None, :], x.shape[1], axis=1)
    feat = jnp.concatenate([x, cond_bn, text_embed, spk], axis=-1)
    return feat @ jnp.transpose(raw["w_proj"]) + raw["bias"][None, None, :]


if __name__ == "__main__":
    B, N = 2, 1024
    key = jax.random.PRNGKey(0)
    kparam, kx, ks_, kc, kt = jax.random.split(key, 5)
    params = init_params(kparam)

    x = jax.random.normal(kx, (B, N, MEL_DIM), jnp.float32)
    spk = jax.random.normal(ks_, (B, N, SPK_DIM), jnp.float32)
    cond = jax.random.normal(kc, (B, N, COND_FEAT), jnp.float32)
    text_embed = jax.random.normal(kt, (B, N, TEXT_DIM), jnp.float32)

    out = jax.block_until_ready(
        input_embedding_forward(x, spk, cond, text_embed, params, drop_audio_cond=False))
    out_drop = jax.block_until_ready(
        input_embedding_forward(x, spk, cond, text_embed, params, drop_audio_cond=True))

    ref = reference_forward(x, spk, cond, text_embed, params["raw"], drop_audio_cond=False)
    ref_drop = reference_forward(x, spk, cond, text_embed, params["raw"], drop_audio_cond=True)

    assert out.shape == (B, N, OUT_DIM)
    assert jnp.allclose(out, ref, atol=2e-2, rtol=2e-2)
    assert jnp.allclose(out_drop, ref_drop, atol=2e-2, rtol=2e-2)
    print("KERNEL_OK")
</pallas_src>

<mosaic_0001>
module attributes {stable_mosaic.version = 11 : i64} {
  func.func @_spk_encoder_kernel(%arg0: i32, %arg1: i32, %arg2: memref<1x256x80xbf16, #tpu.memory_space<vmem>>, %arg3: memref<80x256xbf16, #tpu.memory_space<vmem>>, %arg4: memref<1x256xf32, #tpu.memory_space<vmem>>, %arg5: memref<256x128xbf16, #tpu.memory_space<vmem>>, %arg6: memref<1x128xf32, #tpu.memory_space<vmem>>, %arg7: memref<1x1x128xf32, #tpu.memory_space<vmem>>, %arg8: memref<1x256xf32, #tpu.memory_space<vmem>>) attributes {dimension_semantics = [#tpu.dimension_semantics<parallel>, #tpu.dimension_semantics<arbitrary>], iteration_bounds = array<i64: 2, 4>, scalar_prefetch = 0 : i64, scratch_operands = 1 : i64, tpu.core_type = #tpu.core_type<tc>, window_params = [{transform_indices = @transform_0, window_bounds = array<i64: 1, 256, 80>}, {pipeline_mode = #tpu.pipeline_mode<synchronous>, transform_indices = @transform_1, window_bounds = array<i64: 80, 256>}, {pipeline_mode = #tpu.pipeline_mode<synchronous>, transform_indices = @transform_2, window_bounds = array<i64: 1, 256>}, {pipeline_mode = #tpu.pipeline_mode<synchronous>, transform_indices = @transform_3, window_bounds = array<i64: 256, 128>}, {pipeline_mode = #tpu.pipeline_mode<synchronous>, transform_indices = @transform_4, window_bounds = array<i64: 1, 128>}, {transform_indices = @transform_5, window_bounds = array<i64: 1, 1, 128>}]} {
    %c0_i32 = arith.constant 0 : i32
    %0 = arith.cmpi eq, %arg1, %c0_i32 : i32
    %1 = arith.extui %0 : i1 to i32
    %c0_i32_0 = arith.constant 0 : i32
    %2 = arith.cmpi ne, %1, %c0_i32_0 : i32
    scf.if %2 {
      %cst_14 = arith.constant 0.000000e+00 : f32
      %20 = vector.broadcast %cst_14 : f32 to vector<1x256xf32>
      %c0_15 = arith.constant 0 : index
      %c0_16 = arith.constant 0 : index
      %21 = vector.load %arg8[%c0_15, %c0_16] : memref<1x256xf32, #tpu.memory_space<vmem>>, vector<1x256xf32>
      tpu.vector_store %arg8[%c0_15, %c0_16], %20 {strides = array<i32>} : memref<1x256xf32, #tpu.memory_space<vmem>>, vector<1x256xf32>,
    } else {
    }
    %c0 = arith.constant 0 : index
    %c0_1 = arith.constant 0 : index
    %c0_2 = arith.constant 0 : index
    %3 = vector.load %arg2[%c0, %c0_1, %c0_2] : memref<1x256x80xbf16, #tpu.memory_space<vmem>>, vector<1x256x80xbf16>
    %4 = vector.shape_cast %3 : vector<1x256x80xbf16> to vector<256x80xbf16>
    %c0_3 = arith.constant 0 : index
    %c0_4 = arith.constant 0 : index
    %5 = vector.load %arg3[%c0_3, %c0_4] : memref<80x256xbf16, #tpu.memory_space<vmem>>, vector<80x256xbf16>
    %cst = arith.constant dense<0.000000e+00> : vector<256x256xf32>
    %6 = tpu.matmul %4, %5, %cst {dimension_numbers = #tpu.dot_dimension_numbers<[1], [0], [0], [1], [0, 0, 1, 1], [], []>} : vector<256x80xbf16>, vector<80x256xbf16>, vector<256x256xf32> -> vector<256x256xf32>
    %c0_5 = arith.constant 0 : index
    %c0_6 = arith.constant 0 : index
    %7 = vector.load %arg4[%c0_5, %c0_6] : memref<1x256xf32, #tpu.memory_space<vmem>>, vector<1x256xf32>
    %8 = vector.broadcast %7 : vector<1x256xf32> to vector<256x256xf32>
    %9 = arith.addf %6, %8 : vector<256x256xf32>
    %cst_7 = arith.constant 0.000000e+00 : f32
    %10 = vector.broadcast %cst_7 : f32 to vector<256x256xf32>
    %11 = arith.maximumf %9, %10 : vector<256x256xf32>
    %c0_8 = arith.constant 0 : index
    %c0_9 = arith.constant 0 : index
    %12 = vector.load %arg8[%c0_8, %c0_9] : memref<1x256xf32, #tpu.memory_space<vmem>>, vector<1x256xf32>
    %cst_10 = arith.constant dense<0.000000e+00> : vector<256xf32>
    %13 = vector.multi_reduction <add>, %11, %cst_10 [0] : vector<256x256xf32> to vector<256xf32>
    %14 = vector.shape_cast %13 : vector<256xf32> to vector<1x256xf32>
    %15 = arith.addf %12, %14 : vector<1x256xf32>
    %c0_11 = arith.constant 0 : index
    %c0_12 = arith.constant 0 : index
    %16 = vector.load %arg8[%c0_11, %c0_12] : memref<1x256xf32, #tpu.memory_space<vmem>>, vector<1x256xf32>
    tpu.vector_store %arg8[%c0_11, %c0_12], %15 {strides = array<i32>} : memref<1x256xf32, #tpu.memory_space<vmem>>, vector<1x256xf32>,
    %c3_i32 = arith.constant 3 : i32
    %17 = arith.cmpi eq, %arg1, %c3_i32 : i32
    %18 = arith.extui %17 : i1 to i32
    %c0_i32_13 = arith.constant 0 : i32
    %19 = arith.cmpi ne, %18, %c0_i32_13 : i32
    scf.if %19 {
      %c0_14 = arith.constant 0 : index
      %c0_15 = arith.constant 0 : index
      %20 = vector.load %arg8[%c0_14, %c0_15] : memref<1x256xf32, #tpu.memory_space<vmem>>, vector<1x256xf32>
      %cst_16 = arith.constant 9.765625E-4 : f32
      %21 = vector.broadcast %cst_16 : f32 to vector<1x256xf32>
      %22 = arith.mulf %20, %21 : vector<1x256xf32>
      %23 = arith.truncf %22 : vector<1x256xf32> to vector<1x256xbf16>
      %c0_17 = arith.constant 0 : index
      %c0_18 = arith.constant 0 : index
      %24 = vector.load %arg5[%c0_17, %c0_18] : memref<256x128xbf16, #tpu.memory_space<vmem>>, vector<256x128xbf16>
      %cst_19 = arith.constant dense<0.000000e+00> : vector<1x128xf32>
      %25 = tpu.matmul %23, %24, %cst_19 {dimension_numbers = #tpu.dot_dimension_numbers<[1], [0], [0], [1], [0, 0, 1, 1], [], []>} : vector<1x256xbf16>, vector<256x128xbf16>, vector<1x128xf32> -> vector<1x128xf32>
      %c0_20 = arith.constant 0 : index
      %c0_21 = arith.constant 0 : index
      %26 = vector.load %arg6[%c0_20, %c0_21] : memref<1x128xf32, #tpu.memory_space<vmem>>, vector<1x128xf32>
      %27 = arith.addf %25, %26 : vector<1x128xf32>
      %c0_22 = arith.constant 0 : index
      %c0_23 = arith.constant 0 : index
      %c0_24 = arith.constant 0 : index
      %28 = vector.load %arg7[%c0_22, %c0_23, %c0_24] : memref<1x1x128xf32, #tpu.memory_space<vmem>>, vector<1x1x128xf32>
      %29 = vector.shape_cast %28 : vector<1x1x128xf32> to vector<1x128xf32>
      %30 = vector.shape_cast %27 : vector<1x128xf32> to vector<1x1x128xf32>
      tpu.vector_store %arg7[%c0_22, %c0_23, %c0_24], %30 {strides = array<i32>} : memref<1x1x128xf32, #tpu.memory_space<vmem>>, vector<1x1x128xf32>,
    } else {
    }
    return
  }
  func.func @transform_0(%arg0: i32, %arg1: i32) -> (i32, i32, i32) {
    %c0_i32 = arith.constant 0 : i32
    %c0_i32_0 = arith.constant 0 : i32
    return %arg0, %arg1, %c0_i32 : i32, i32, i32
  }
  func.func @transform_1(%arg0: i32, %arg1: i32) -> (i32, i32) {
    %c0_i32 = arith.constant 0 : i32
    %c0_i32_0 = arith.constant 0 : i32
    %c0_i32_1 = arith.constant 0 : i32
    return %c0_i32, %c0_i32_0 : i32, i32
  }
  func.func @transform_2(%arg0: i32, %arg1: i32) -> (i32, i32) {
    %c0_i32 = arith.constant 0 : i32
    %c0_i32_0 = arith.constant 0 : i32
    %c0_i32_1 = arith.constant 0 : i32
    return %c0_i32, %c0_i32_0 : i32, i32
  }
  func.func @transform_3(%arg0: i32, %arg1: i32) -> (i32, i32) {
    %c0_i32 = arith.constant 0 : i32
    %c0_i32_0 = arith.constant 0 : i32
    %c0_i32_1 = arith.constant 0 : i32
    return %c0_i32, %c0_i32_0 : i32, i32
  }
  func.func @transform_4(%arg0: i32, %arg1: i32) -> (i32, i32) {
    %c0_i32 = arith.constant 0 : i32
    %c0_i32_0 = arith.constant 0 : i32
    %c0_i32_1 = arith.constant 0 : i32
    return %c0_i32, %c0_i32_0 : i32, i32
  }
  func.func @transform_5(%arg0: i32, %arg1: i32) -> (i32, i32, i32) {
    %c0_i32 = arith.constant 0 : i32
    %c0_i32_0 = arith.constant 0 : i32
    %c0_i32_1 = arith.constant 0 : i32
    return %arg0, %c0_i32, %c0_i32_0 : i32, i32, i32
  }
}

</mosaic_0001>

<bundles_post_ra>
// kernel: tpu_custom_call.1
= control target key start
LH: loop header
LB: loop body
LE: loop exit
PB: predicated region body
PF: predicated region fallthrough
CT: control target
= control target key end

     0   :  { %10 = vsyncpa [#allocation4], 0  ;;  %s1900_s0 = inlined_call_operand.vmem [shape: bf16[2,1024,80], index: 0, kind: input, shape index: {}]   ;;  %s1901_s1 = inlined_call_operand.vmem [shape: bf16[80,256], index: 1, kind: input, shape index: {}]   ;;  %s1902_s2 = inlined_call_operand.vmem [shape: f32[1,256], index: 2, kind: input, shape index: {}]   ;;  %s1903_s3 = inlined_call_operand.vmem [shape: bf16[256,128], index: 3, kind: input, shape index: {}]   ;;  %s1904_s4 = inlined_call_operand.vmem [shape: f32[1,128], index: 4, kind: input, shape index: {}]   ;;  %s1905_s5 = inlined_call_operand.hbm [shape: f32[2,1,128], index: 5, kind: output, shape index: {}]  }
   0x1   :  { %12 = vsyncpa [#allocation4 + $0x1], 0  ;;  %s1475_s18 = smov 0   ;;  %s1477_s19 = smov 0  }
   0x2   :  { %s1479_s20 = smov 0   ;;  %s1481_s21 = smov 0  }
   0x3   :  { %s1483_s22 = smov 0   ;;  %s1485_s23 = smov 0  }
   0x4   :  { %s1487_s24 = smov 0   ;;  %s1489_s25 = smov 0  }
   0x5 LB: > { %s1123_s26 = sadd.s32 4294967295, %s1439_s25   ;;  %s1124_s27 = sadd.s32 4294967294, %s1439_s25   ;;  %s1439_s25 = sphi %s1489_s25, %s18_s25   ;;  %s1435_s24 = sphi %s1487_s24, %s1914_s24   ;;  %s1431_s23 = sphi %s1485_s23, %s1913_s23   ;;  %s1427_s22 = sphi %s1483_s22, %s1912_s22   ;;  %s1423_s21 = sphi %s1481_s21, %s1911_s21   ;;  %s1419_s20 = sphi %s1479_s20, %s1910_s20   ;;  %s1415_s19 = sphi %s1477_s19, %s1909_s19   ;;  %s1411_s18 = sphi %s1475_s18, %s1908_s18  }
   0x6   : > { %s27_s28 = sadd.s32 1, %s1431_s23  ;;  %s30_s29 = sadd.s32 1, %s1435_s24 }
   0x7   : > { %p28_p0 = scmp.ge.s32.totalorder %s27_s28, 4  ;;  %p159_p1 = scmp.ne.s32.totalorder %s1419_s20, %s1415_s19 }
   0x8   : > { %p160_p2 = scmp.eq.s32.totalorder %s1123_s26, 7  ;;  %p165_p4 = scmp.ne.s32.totalorder %s1415_s19, %s1411_s18 }
   0x9   : > { %s1916_s28 = smov (%p28_p0, %s27_s28), 0  ;;  %s1918_s29 = smov (!%p28_p0, %s30_s29), %s1435_s24 }
   0xa   : > { %p1524_p3 = por %p160_p2, %p159_p1  ;;  %p32_p5 = scmp.ge.s32.totalorder %s1918_s29, 2 }
   0xb   : > { %p166_p6 = scmp.eq.s32.totalorder %s1124_s27, 7  ;;  %p1127_p7 = scmp.ge.s32.totalorder %s1439_s25, 1 }
   0xc   : > { %p209_p8 = scmp.lt.s32.totalorder %s1439_s25, 9  ;;  %s1920_s29 = smov (%p32_p5, %s1918_s29), 0 }
   0xd   : > { %p1534_p9 = por %p166_p6, %p165_p4  ;;  %s146_s7 = ssub.s32 %s1435_s24, %s1920_s29 }
   0xe   : > { %p210_p10 = pnand %p1127_p7, %p209_p8  ;;  %s149_s8 = sadd.s32 1, %s1419_s20 }
   0xf   : > { %p147_p11 = scmp.eq.s32.totalorder %s146_s7, 0  ;;  %s238_s10 = sand.u32 (!%p210_p10), 1, %s1415_s19  }
  0x10   : > { %213 = sbr.rel (%p210_p10) target bundleno = 623 (0x26f), region = 40  ;;  %s1128_s11 = sshll.u32 (!%p210_p10), %s1423_s21, 5 }
  0x11   : > { %s1542_s9 = scalar_select %p147_p11, %s1419_s20, %s149_s8  }
  0x12   : > { %p241_p12 = scmp.lt.s32.totalorder (!%p210_p10), %s1427_s22, 1  ;;  %p243_p13 = scmp.lt.s32.totalorder (!%p210_p10), %s1128_s11, 127 }
  0x13   : > { %s1555_s27 = scalar_lea.vmem (!%p210_p10), [#allocation3], %s238_s10  ;;  %p1131_p0 = scmp.ne.s32.totalorder (!%p210_p10), %s1423_s21, 0 }
  0x15   : > { %s242_s12 = scalar_select %p241_p12, %s1427_s22, 1 }
  0x16   : > { %s1922_s11 = smov (!%p243_p13, %s1128_s11), 127  ;;  %254 = sbr.rel (%p1131_p0) target bundleno = 31 (0x1f), region = 44 }
  0x17   : > { %s1129_s13 = sshll.u32 %s242_s12, 7 }
  0x18   : > { %s246_s14 = sadd.s32 %s1129_s13, %s1922_s11 }
  0x19   : > { %s1130_s15 = sshll.u32 %s246_s14, 2 }
  0x1a   : > { %s1551_s26 = scalar_lea.vmem %s1900_s0, %s1130_s15 }
  0x1b   : > { %v255_v0 = vlaneseq  ;;  %v1441_v1 = vmov 0.0  }
  0x1d   : > { %vm257_vm0 = vcmp.lt.s32.totalorder %v255_v0, 256 }
  0x1e   : > { %259 = vst.msk [vmem:[#allocation2] sm:$0x3] %vm257_vm0, %v1441_v1 }
  0x1f PF: > { %v1300_v2 = vld [vmem:[%s1901_s1 + $0x44] ss:$8 sps:$4 sm:$0xff]   ;;  %v1302_v3 = vld [vmem:[%s1901_s1 + $0x40] ss:$8 sps:$4 sm:$0xff]   ;;  %v1442_v4 = vmov 0   ;;  %vm444_vm1 = vcmask 654336   ;;  %v304_v45 = vlaneseq }
  0x20   : > { %525 = vmatprep.mubr.bf16.mxu0 %v1442_v4  ;;  %605 = vmatprep.mubr.bf16.mxu1 %v1442_v4  ;;  %v1303_v5 = vld [vmem:[%s1901_s1 + $0x34] ss:$8 sps:$4 sm:$0xff]   ;;  %v1305_v6 = vld [vmem:[%s1901_s1 + $0x30] ss:$8 sps:$4 sm:$0xff]   ;;  %v1306_v7 = vld [vmem:[%s1901_s1 + $0x24] ss:$8 sps:$4 sm:$0xff]  }
  0x21   : > { %499 = vmatprep.subr.bf16.mxu0 %v1300_v2  ;;  %1216 = vmatprep.subr.bf16.mxu1 %v1300_v2  ;;  %v1308_v8 = vld [vmem:[%s1901_s1 + $0x20] ss:$8 sps:$4 sm:$0xff]   ;;  %v1309_v9 = vld [vmem:[%s1901_s1 + $0x14] ss:$8 sps:$4 sm:$0xff]   ;;  %v1311_v10 = vld [vmem:[%s1901_s1 + $0x10] ss:$8 sps:$4 sm:$0xff]  }
  0x22   : > { %500 = vmatpush1.bf16.msra.mxu0 %v1302_v3  ;;  %1221 = vmatpush1.bf16.msra.mxu1 %v1302_v3  ;;  %v1312_v11 = vld [vmem:[%s1901_s1 + $0x4] ss:$8 sps:$4 sm:$0xff]   ;;  %v1314_v12 = vld [vmem:[%s1901_s1] ss:$8 sps:$4 sm:$0xff]   ;;  %v1317_v17 = vld [vmem:[%s1551_s26 + $0x10] sm:$0xff]   ;;  %v1657_v50 = vshrl.u32 %v304_v45, 7 }
  0x23   : > { %501 = vmatprep.subr.bf16.mxu0 %v1303_v5  ;;  %1217 = vmatprep.subr.bf16.mxu1 %v1303_v5  ;;  %v1315_v13 = vld [vmem:[%s1551_s26] sm:$0xff]   ;;  %v1316_v15 = vld [vmem:[%s1551_s26 + $0x8] sm:$0xff]   ;;  %v1323_v18 = vld [vmem:[%s1551_s26 + $0x50] sm:$0xff]   ;;  %vm846_vm2 = vcmp.lt.s32.totalorder %v304_v45, 256  ;;  %p1174_p1 = scmp.ne.s32.totalorder %s1423_s21, 3 }
  0x24   : > { %v1319_v14 = vld [vmem:[%s1551_s26 + $0x40] sm:$0xff]   ;;  %v1321_v16 = vld [vmem:[%s1551_s26 + $0x48] sm:$0xff]   ;;  %v1318_v19 = vld [vmem:[%s1551_s26 + $0x18] sm:$0xff]   ;;  %v306_v55 = vsub.s32 0, %v1657_v50  ;;  %v310_v57 = vsub.s32 1, %v1657_v50 }
  0x25   : > { %v1325_v20 = vld [vmem:[%s1551_s26 + $0x58] sm:$0xff]   ;;  %v1320_v21 = vld [vmem:[%s1551_s26 + $0x20] sm:$0xff]   ;;  %v1322_v23 = vld [vmem:[%s1551_s26 + $0x28] sm:$0xff]  }
  0x26   : > { %502 = vmatpush1.bf16.msra.mxu0 %v1305_v6  ;;  %1222 = vmatpush1.bf16.msra.mxu1 %v1305_v6  ;;  %v1327_v22 = vld [vmem:[%s1551_s26 + $0x60] sm:$0xff]   ;;  %v1328_v24 = vld [vmem:[%s1551_s26 + $0x68] sm:$0xff]   ;;  %v1324_v25 = vld [vmem:[%s1551_s26 + $0x30] sm:$0xff]  }
  0x27   : > { %503 = vmatprep.subr.bf16.mxu0 %v1306_v7  ;;  %1218 = vmatprep.subr.bf16.mxu1 %v1306_v7  ;;  %v1329_v26 = vld [vmem:[%s1551_s26 + $0x70] sm:$0xff]   ;;  %v1326_v27 = vld [vmem:[%s1551_s26 + $0x38] sm:$0xff]   ;;  %v302_v56 = vld [vmem:[%s1902_s2] sm:$0x3] }
  0x28   : > { %v1330_v28 = vld [vmem:[%s1551_s26 + $0x78] sm:$0xff]   ;;  %v1674_v62 = vrot.slane %v302_v56, %v306_v55  ;;  %v1678_v63 = vrot.slane %v302_v56, %v310_v57 }
  0x2a   : > { %504 = vmatpush1.bf16.msra.mxu0 %v1308_v8  ;;  %1223 = vmatpush1.bf16.msra.mxu1 %v1308_v8 }
  0x2b   : > { %505 = vmatprep.subr.bf16.mxu0 %v1309_v9  ;;  %1219 = vmatprep.subr.bf16.mxu1 %v1309_v9 }
  0x2e   : > { %506 = vmatpush1.bf16.msra.mxu0 %v1311_v10  ;;  %1224 = vmatpush1.bf16.msra.mxu1 %v1311_v10 }
  0x2f   : > { %507 = vmatprep.subr.bf16.mxu0 %v1312_v11  ;;  %1220 = vmatprep.subr.bf16.mxu1 %v1312_v11 }
  0x32   : > { %508 = vmatpush1.bf16.msra.mxu0 %v1314_v12  ;;  %1225 = vmatpush1.bf16.msra.mxu1 %v1314_v12 }
  0x35   : > { %1158 = vmatmul.mubr.msk.bf16.vlgmr.msra.gmra.mxu0 %vm444_vm1, %v1315_v13  ;;  %1166 = vmatmul.mubr.msk.bf16.vlgmr.msra.gmra.mxu1 %vm444_vm1, %v1319_v14 }
  0x36   : > { %535 = vmatprep.mubr.bf16.mxu0 %v1442_v4  ;;  %615 = vmatprep.mubr.bf16.mxu1 %v1442_v4 }
  0x3d   : > { %1159 = vmatmul.mubr.msk.bf16.gmra.mxu0 %vm444_vm1, %v1316_v15  ;;  %1167 = vmatmul.mubr.msk.bf16.gmra.mxu1 %vm444_vm1, %v1321_v16 }
  0x3e   : > { %545 = vmatprep.mubr.bf16.mxu0 %v1442_v4  ;;  %625 = vmatprep.mubr.bf16.mxu1 %v1442_v4 }
  0x45   : > { %1160 = vmatmul.mubr.msk.bf16.gmra.mxu0 %vm444_vm1, %v1317_v17  ;;  %1168 = vmatmul.mubr.msk.bf16.gmra.mxu1 %vm444_vm1, %v1323_v18 }
  0x46   : > { %555 = vmatprep.mubr.bf16.mxu0 %v1442_v4  ;;  %635 = vmatprep.mubr.bf16.mxu1 %v1442_v4 }
  0x4d   : > { %1161 = vmatmul.mubr.msk.bf16.gmra.mxu0 %vm444_vm1, %v1318_v19  ;;  %1169 = vmatmul.mubr.msk.bf16.gmra.mxu1 %vm444_vm1, %v1325_v20 }
  0x4e   : > { %565 = vmatprep.mubr.bf16.mxu0 %v1442_v4  ;;  %645 = vmatprep.mubr.bf16.mxu1 %v1442_v4 }
  0x55   : > { %1162 = vmatmul.mubr.msk.bf16.gmra.mxu0 %vm444_vm1, %v1320_v21  ;;  %1170 = vmatmul.mubr.msk.bf16.gmra.mxu1 %vm444_vm1, %v1327_v22 }
  0x56   : > { %575 = vmatprep.mubr.bf16.mxu0 %v1442_v4  ;;  %655 = vmatprep.mubr.bf16.mxu1 %v1442_v4 }
  0x5d   : > { %1163 = vmatmul.mubr.msk.bf16.gmra.mxu0 %vm444_vm1, %v1322_v23  ;;  %1171 = vmatmul.mubr.msk.bf16.gmra.mxu1 %vm444_vm1, %v1328_v24 }
  0x5e   : > { %585 = vmatprep.mubr.bf16.mxu0 %v1442_v4  ;;  %665 = vmatprep.mubr.bf16.mxu1 %v1442_v4 }
  0x65   : > { %1164 = vmatmul.mubr.msk.bf16.gmra.mxu0 %vm444_vm1, %v1324_v25  ;;  %1172 = vmatmul.mubr.msk.bf16.gmra.mxu1 %vm444_vm1, %v1329_v26 }
  0x66   : > { %595 = vmatprep.mubr.bf16.mxu0 %v1442_v4  ;;  %675 = vmatprep.mubr.bf16.mxu1 %v1442_v4 }
  0x6d   : > { %1165 = vmatmul.mubr.msk.bf16.gmra.mxu0 %vm444_vm1, %v1326_v27  ;;  %1173 = vmatmul.mubr.msk.bf16.gmra.mxu1 %vm444_vm1, %v1330_v28 }
  0xf5   : > { %v527_v29 = vpop.f32.mrf.mxu0  ;;  %v1636_v30 = vpop.f32.mrf.mxu1 }
  0xf6   : > { %v528_v6 = vadd.f32 %v527_v29, %v1674_v62 }
  0xf7   : > { %v529_v31 = vpop.f32.mrf.mxu0  ;;  %v1638_v32 = vpop.f32.mrf.mxu1 }
  0xf8   : > { %v530_v8 = vadd.f32 %v529_v31, %v1678_v63  ;;  %v686_v18 = vmax.f32 %v528_v6, 0.0 }
  0xf9   : > { %v531_v33 = vpop.f32.mrf.mxu0  ;;  %v1640_v34 = vpop.f32.mrf.mxu1 }
  0xfa   : > { %v532_v2 = vadd.f32 %v531_v33, %v1674_v62  ;;  %v687_v21 = vmax.f32 %v530_v8, 0.0 }
  0xfb   : > { %v533_v35 = vpop.f32.mrf.mxu0  ;;  %v1642_v36 = vpop.f32.mrf.mxu1 }
  0xfc   : > { %v534_v3 = vadd.f32 %v533_v35, %v1678_v63  ;;  %v688_v12 = vmax.f32 %v532_v2, 0.0 }
  0xfd   : > { %v537_v37 = vpop.f32.mrf.mxu0  ;;  %v1644_v38 = vpop.f32.mrf.mxu1 }
  0xfe   : > { %v538_v7 = vadd.f32 %v537_v37, %v1674_v62  ;;  %v689_v14 = vmax.f32 %v534_v3, 0.0  ;;  %v751_v25 = vadd.f32 %v688_v12, %v686_v18 }
  0xff   : > { %v539_v39 = vpop.f32.mrf.mxu0  ;;  %v1646_v40 = vpop.f32.mrf.mxu1 }
 0x100   : > { %v540_v9 = vadd.f32 %v539_v39, %v1678_v63  ;;  %v690_v19 = vmax.f32 %v538_v7, 0.0  ;;  %v788_v28 = vadd.f32 %v689_v14, %v687_v21 }
 0x101   : > { %v541_v41 = vpop.f32.mrf.mxu0  ;;  %v1648_v42 = vpop.f32.mrf.mxu1 }
 0x102   : > { %v542_v13 = vadd.f32 %v541_v41, %v1674_v62  ;;  %v691_v22 = vmax.f32 %v540_v9, 0.0  ;;  %v752_v37 = vadd.f32 %v751_v25, %v690_v19 }
 0x103   : > { %v543_v43 = vpop.f32.mrf.mxu0  ;;  %v1650_v44 = vpop.f32.mrf.mxu1 }
 0x104   : > { %v544_v15 = vadd.f32 %v543_v43, %v1678_v63  ;;  %v692_v26 = vmax.f32 %v542_v13, 0.0  ;;  %v789_v43 = vadd.f32 %v788_v28, %v691_v22 }
 0x105   : > { %v547_v46 = vpop.f32.mrf.mxu0  ;;  %v1652_v47 = vpop.f32.mrf.mxu1 }
 0x106   : > { %v548_v20 = vadd.f32 %v547_v46, %v1674_v62  ;;  %v693_v29 = vmax.f32 %v544_v15, 0.0  ;;  %v753_v2 = vadd.f32 %v752_v37, %v692_v26 }
 0x107   : > { %v549_v48 = vpop.f32.mrf.mxu0  ;;  %v1654_v49 = vpop.f32.mrf.mxu1 }
 0x108   : > { %v550_v23 = vadd.f32 %v549_v48, %v1678_v63  ;;  %v694_v39 = vmax.f32 %v548_v20, 0.0  ;;  %v790_v6 = vadd.f32 %v789_v43, %v693_v29 }
 0x109   : > { %v551_v51 = vpop.f32.mrf.mxu0  ;;  %v1659_v52 = vpop.f32.mrf.mxu1 }
 0x10a   : > { %v552_v27 = vadd.f32 %v551_v51, %v1674_v62  ;;  %v695_v46 = vmax.f32 %v550_v23, 0.0  ;;  %v754_v12 = vadd.f32 %v753_v2, %v694_v39 }
 0x10b   : > { %v553_v53 = vpop.f32.mrf.mxu0  ;;  %v1661_v54 = vpop.f32.mrf.mxu1 }
 0x10c   : > { %v554_v31 = vadd.f32 %v553_v53, %v1678_v63  ;;  %v696_v3 = vmax.f32 %v552_v27, 0.0  ;;  %v791_v14 = vadd.f32 %v790_v6, %v695_v46 }
 0x10d   : > { %v557_v58 = vpop.f32.mrf.mxu0  ;;  %v1668_v59 = vpop.f32.mrf.mxu1 }
 0x10e   : > { %v558_v41 = vadd.f32 %v557_v58, %v1674_v62  ;;  %v697_v7 = vmax.f32 %v554_v31, 0.0  ;;  %v755_v19 = vadd.f32 %v754_v12, %v696_v3 }
 0x10f   : > { %v559_v60 = vpop.f32.mrf.mxu0  ;;  %v1670_v61 = vpop.f32.mrf.mxu1 }
 0x110   : > { %v560_v48 = vadd.f32 %v559_v60, %v1678_v63  ;;  %v698_v13 = vmax.f32 %v558_v41, 0.0  ;;  %v792_v21 = vadd.f32 %v791_v14, %v697_v7 }
 0x111   : > { %v561_v0 = vpop.f32.mrf.mxu0  ;;  %v1680_v1 = vpop.f32.mrf.mxu1 }
 0x112   : > { %v562_v51 = vadd.f32 %v561_v0, %v1674_v62  ;;  %v699_v15 = vmax.f32 %v560_v48, 0.0  ;;  %v756_v26 = vadd.f32 %v755_v19, %v698_v13 }
 0x113   : > { %v563_v4 = vpop.f32.mrf.mxu0  ;;  %v1684_v5 = vpop.f32.mrf.mxu1 }
 0x114   : > { %v564_v53 = vadd.f32 %v563_v4, %v1678_v63  ;;  %v700_v20 = vmax.f32 %v562_v51, 0.0  ;;  %v793_v28 = vadd.f32 %v792_v21, %v699_v15 }
 0x115   : > { %v567_v10 = vpop.f32.mrf.mxu0  ;;  %v1690_v11 = vpop.f32.mrf.mxu1 }
 0x116   : > { %v568_v58 = vadd.f32 %v567_v10, %v1674_v62  ;;  %v701_v22 = vmax.f32 %v564_v53, 0.0  ;;  %v757_v37 = vadd.f32 %v756_v26, %v700_v20 }
 0x117   : > { %v569_v16 = vpop.f32.mrf.mxu0  ;;  %v1694_v17 = vpop.f32.mrf.mxu1 }
 0x118   : > { %v570_v60 = vadd.f32 %v569_v16, %v1678_v63  ;;  %v702_v27 = vmax.f32 %v568_v58, 0.0  ;;  %v794_v41 = vadd.f32 %v793_v28, %v701_v22 }
 0x119   : > { %v571_v24 = vpop.f32.mrf.mxu0  ;;  %v1700_v35 = vpop.f32.mrf.mxu1 }
 0x11a   : > { %v572_v0 = vadd.f32 %v571_v24, %v1674_v62  ;;  %v703_v29 = vmax.f32 %v570_v60, 0.0  ;;  %v758_v2 = vadd.f32 %v757_v37, %v702_v27 }
 0x11b   : > { %v573_v33 = vpop.f32.mrf.mxu0  ;;  %v1706_v9 = vpop.f32.mrf.mxu1 }
 0x11c   : > { %v574_v4 = vadd.f32 %v573_v33, %v1678_v63  ;;  %v704_v39 = vmax.f32 %v572_v0, 0.0  ;;  %v795_v51 = vadd.f32 %v794_v41, %v703_v29 }
 0x11d   : > { %v577_v56 = vpop.f32.mrf.mxu0  ;;  %v1712_v25 = vpop.f32.mrf.mxu1 }
 0x11e   : > { %v578_v10 = vadd.f32 %v577_v56, %v1674_v62  ;;  %v705_v43 = vmax.f32 %v574_v4, 0.0  ;;  %v759_v53 = vadd.f32 %v758_v2, %v704_v39  ;;  %v608_v39 = vadd.f32 %v1636_v30, %v1674_v62 }
 0x11f   : > { %v579_v8 = vpop.f32.mrf.mxu0  ;;  %v1718_v48 = vpop.f32.mrf.mxu1  ;;  %v610_v2 = vadd.f32 %v1638_v32, %v1678_v63 }
 0x120   : > { %v580_v16 = vadd.f32 %v579_v8, %v1678_v63  ;;  %v706_v3 = vmax.f32 %v578_v10, 0.0  ;;  %v796_v58 = vadd.f32 %v795_v51, %v705_v43 }
 0x121   : > { %v581_v18 = vpop.f32.mrf.mxu0  ;;  %v1723_v60 = vpop.f32.mrf.mxu1 }
 0x122   : > { %v582_v24 = vadd.f32 %v581_v18, %v1674_v62  ;;  %v707_v6 = vmax.f32 %v580_v16, 0.0  ;;  %v760_v18 = vadd.f32 %v759_v53, %v706_v3  ;;  %v612_v3 = vadd.f32 %v1640_v34, %v1674_v62 }
 0x123   : > { %v583_v23 = vpop.f32.mrf.mxu0  ;;  %v1727_v28 = vpop.f32.mrf.mxu1 }
 0x124   : > { %v584_v33 = vadd.f32 %v583_v23, %v1678_v63  ;;  %v708_v8 = vmax.f32 %v582_v24, 0.0  ;;  %v797_v0 = vadd.f32 %v796_v58, %v707_v6  ;;  %v720_v34 = vmax.f32 %v612_v3, 0.0 }
 0x125   : > { %v587_v31 = vpop.f32.mrf.mxu0  ;;  %v1737_v51 = vpop.f32.mrf.mxu1 }
 0x126   : > { %v588_v56 = vadd.f32 %v587_v31, %v1674_v62  ;;  %v709_v14 = vmax.f32 %v584_v33, 0.0  ;;  %v761_v22 = vadd.f32 %v760_v18, %v708_v8  ;;  %v718_v8 = vmax.f32 %v608_v39, 0.0 }
 0x127   : > { %v589_v46 = vpop.f32.mrf.mxu0  ;;  %v1744_v18 = vpop.f32.mrf.mxu1 }
 0x128   : > { %v590_v12 = vadd.f32 %v589_v46, %v1678_v63  ;;  %v710_v19 = vmax.f32 %v588_v56, 0.0  ;;  %v798_v27 = vadd.f32 %v797_v0, %v709_v14 }
 0x129   : > { %v591_v7 = vpop.f32.mrf.mxu0 }
 0x12a   : > { %v592_v13 = vadd.f32 %v591_v7, %v1674_v62  ;;  %v711_v4 = vmax.f32 %v590_v12, 0.0  ;;  %v762_v29 = vadd.f32 %v761_v22, %v710_v19  ;;  %v614_v12 = vadd.f32 %v1642_v36, %v1678_v63 }
 0x12b   : > { %v593_v15 = vpop.f32.mrf.mxu0  ;;  %v620_v19 = vadd.f32 %v1646_v40, %v1678_v63  ;;  %v624_v36 = vadd.f32 %v1650_v44, %v1678_v63  ;;  %v632_v40 = vadd.f32 %v1659_v52, %v1674_v62  ;;  %v634_v44 = vadd.f32 %v1661_v54, %v1678_v63 }
 0x12c   : > { %v594_v20 = vadd.f32 %v593_v15, %v1678_v63  ;;  %v712_v23 = vmax.f32 %v592_v13, 0.0  ;;  %v799_v41 = vadd.f32 %v798_v27, %v711_v4  ;;  %v618_v13 = vadd.f32 %v1644_v38, %v1674_v62 }
 0x12d   : > { %v597_v21 = vpop.f32.mrf.mxu0  ;;  %v719_v15 = vmax.f32 %v610_v2, 0.0  ;;  %v721_v22 = vmax.f32 %v614_v12, 0.0  ;;  %v628_v4 = vadd.f32 %v1652_v47, %v1674_v62  ;;  %v630_v27 = vadd.f32 %v1654_v49, %v1678_v63 }
 0x12e   : > { %v598_v26 = vadd.f32 %v597_v21, %v1674_v62  ;;  %v713_v16 = vmax.f32 %v594_v20, 0.0  ;;  %v763_v43 = vadd.f32 %v762_v29, %v712_v23  ;;  %v622_v20 = vadd.f32 %v1648_v42, %v1674_v62 }
 0x12f   : > { %v599_v10 = vpop.f32.mrf.mxu0  ;;  %v722_v38 = vmax.f32 %v618_v13, 0.0  ;;  %v723_v42 = vmax.f32 %v620_v19, 0.0  ;;  %v726_v39 = vmax.f32 %v628_v4, 0.0  ;;  %v638_v47 = vadd.f32 %v1668_v59, %v1674_v62 }
 0x130   : > { %v714_v31 = vmax.f32 %v598_v26, 0.0  ;;  %v600_v37 = vadd.f32 %v599_v10, %v1678_v63  ;;  %v800_v6 = vadd.f32 %v799_v41, %v713_v16  ;;  %v671_v10 = vpop.f32.mrf.mxu1  ;;  %v724_v29 = vmax.f32 %v622_v20, 0.0 }
 0x131   : > { %v601_v24 = vpop.f32.mrf.mxu0  ;;  %v728_v49 = vmax.f32 %v632_v40, 0.0  ;;  %v640_v52 = vadd.f32 %v1670_v61, %v1678_v63  ;;  %v644_v54 = vadd.f32 %v1684_v5, %v1678_v63  ;;  %v648_v59 = vadd.f32 %v1690_v11, %v1674_v62 }
 0x132   : > { %v715_v33 = vmax.f32 %v600_v37, 0.0  ;;  %v602_v46 = vadd.f32 %v601_v24, %v1674_v62  ;;  %v764_v7 = vadd.f32 %v763_v43, %v714_v31  ;;  %v725_v37 = vmax.f32 %v624_v36, 0.0 }
 0x133   : > { %v603_v56 = vpop.f32.mrf.mxu0  ;;  %v727_v43 = vmax.f32 %v630_v27, 0.0  ;;  %v652_v61 = vadd.f32 %v1700_v35, %v1674_v62  ;;  %v654_v5 = vadd.f32 %v1706_v9, %v1678_v63  ;;  %v664_v9 = vadd.f32 %v1727_v28, %v1678_v63 }
 0x134   : > { %v716_v53 = vmax.f32 %v602_v46, 0.0  ;;  %v604_v30 = vadd.f32 %v603_v56, %v1678_v63  ;;  %v801_v58 = vadd.f32 %v800_v6, %v715_v33  ;;  %v673_v33 = vpop.f32.mrf.mxu1  ;;  %v642_v46 = vadd.f32 %v1680_v1, %v1674_v62 }
 0x135   : > { %v729_v56 = vmax.f32 %v634_v44, 0.0  ;;  %v730_v6 = vmax.f32 %v638_v47, 0.0  ;;  %v731_v1 = vmax.f32 %v640_v52, 0.0  ;;  %v737_v36 = vmax.f32 %v654_v5, 0.0 }
 0x136   : > { %v765_v32 = vadd.f32 %v764_v7, %v716_v53  ;;  %v717_v14 = vmax.f32 %v604_v30, 0.0  ;;  %v650_v30 = vadd.f32 %v1694_v17, %v1678_v63  ;;  %v732_v12 = vmax.f32 %v642_v46, 0.0 }
 0x137   : > { %v736_v17 = vmax.f32 %v652_v61, 0.0  ;;  %v672_v27 = vadd.f32 %v671_v10, %v1674_v62 }
 0x138   : > { %v766_v0 = vadd.f32 %v765_v32, %v718_v8  ;;  %v802_v21 = vadd.f32 %v801_v58, %v717_v14  ;;  %v677_v8 = vpop.f32.mrf.mxu1  ;;  %v733_v32 = vmax.f32 %v644_v54, 0.0  ;;  %v734_v14 = vmax.f32 %v648_v59, 0.0 }
 0x139   : > { %v735_v19 = vmax.f32 %v650_v30, 0.0 }
 0x13a   : > { %v767_v23 = vadd.f32 %v766_v0, %v720_v34  ;;  %v803_v26 = vadd.f32 %v802_v21, %v719_v15  ;;  %v658_v34 = vadd.f32 %v1712_v25, %v1674_v62  ;;  %v679_v20 = vpop.f32.mrf.mxu1  ;;  %v660_v21 = vadd.f32 %v1718_v48, %v1678_v63 }
 0x13b   : > { %v668_v25 = vadd.f32 %v1737_v51, %v1674_v62  ;;  %v744_v51 = vmax.f32 %v672_v27, 0.0  ;;  %v680_v10 = vadd.f32 %v679_v20, %v1678_v63 }
 0x13c   : > { %v768_v16 = vadd.f32 %v767_v23, %v722_v38  ;;  %v804_v31 = vadd.f32 %v803_v26, %v721_v22  ;;  %v662_v22 = vadd.f32 %v1723_v60, %v1674_v62  ;;  %v738_v23 = vmax.f32 %v658_v34, 0.0  ;;  %v681_v40 = vpop.f32.mrf.mxu1 }
 0x13d   : > { %v670_v26 = vadd.f32 %v1744_v18, %v1678_v63  ;;  %v742_v44 = vmax.f32 %v668_v25, 0.0  ;;  %v747_v54 = vmax.f32 %v680_v10, 0.0 }
 0x13e   : > { %v769_v24 = vadd.f32 %v768_v16, %v724_v29  ;;  %v805_v41 = vadd.f32 %v804_v31, %v723_v42  ;;  %v739_v29 = vmax.f32 %v660_v21, 0.0  ;;  %v740_v60 = vmax.f32 %v662_v22, 0.0 }
 0x13f   : > { %v741_v16 = vmax.f32 %v664_v9, 0.0  ;;  %v674_v31 = vadd.f32 %v673_v33, %v1678_v63  ;;  %v743_v47 = vmax.f32 %v670_v26, 0.0 }
 0x140   : > { %v806_v2 = vadd.f32 %v805_v41, %v725_v37  ;;  %v770_v3 = vadd.f32 %v769_v24, %v726_v39  ;;  %v678_v39 = vadd.f32 %v677_v8, %v1674_v62  ;;  %v683_v24 = vpop.f32.mrf.mxu1 }
 0x141   : > { %v684_v33 = vadd.f32 %v683_v24, %v1678_v63 }
 0x142   : > { %v771_v7 = vadd.f32 %v770_v3, %v728_v49  ;;  %v807_v53 = vadd.f32 %v806_v2, %v727_v43  ;;  %v682_v43 = vadd.f32 %v681_v40, %v1674_v62  ;;  %v745_v49 = vmax.f32 %v674_v31, 0.0 }
 0x143   : > { %v746_v2 = vmax.f32 %v678_v39, 0.0  ;;  %v1443_v62 = vmov 1966171168  }
 0x144   : > { %v772_v13 = vadd.f32 %v771_v7, %v730_v6  ;;  %v808_v58 = vadd.f32 %v807_v53, %v729_v56  ;;  %v748_v6 = vmax.f32 %v682_v43, 0.0  ;;  %v749_v53 = vmax.f32 %v684_v33, 0.0 }
 0x146   : > { %v773_v15 = vadd.f32 %v772_v13, %v732_v12  ;;  %v809_v11 = vadd.f32 %v808_v58, %v731_v1  ;;  %v829_v58 = vunpack.c.l.s4 %v1443_v62 }
 0x148   : > { %v774_v0 = vadd.f32 %v773_v15, %v734_v14  ;;  %v810_v35 = vadd.f32 %v809_v11, %v733_v32  ;;  %v830_v63 = vunpack.c.0.s8 %v829_v58 }
 0x14a   : > { %v775_v38 = vadd.f32 %v774_v0, %v736_v17  ;;  %v811_v4 = vadd.f32 %v810_v35, %v735_v19  ;;  %v833_v17 = vsub.s32 %v830_v63, %v1657_v50  ;;  %v750_v35 = vld [vmem:[#allocation2] sm:$0x3] }
 0x14c   : > { %v812_v48 = vadd.f32 %v811_v4, %v737_v36  ;;  %v776_v42 = vadd.f32 %v775_v38, %v738_v23 }
 0x14e   : > { %v813_v28 = vadd.f32 %v812_v48, %v739_v29  ;;  %v777_v37 = vadd.f32 %v776_v42, %v740_v60 }
 0x150   : > { %v814_v41 = vadd.f32 %v813_v28, %v741_v16  ;;  %v778_v18 = vadd.f32 %v777_v37, %v742_v44 }
 0x152   : > { %v815_v52 = vadd.f32 %v814_v41, %v743_v47  ;;  %v779_v46 = vadd.f32 %v778_v18, %v744_v51 }
 0x154   : > { %v816_v3 = vadd.f32 %v815_v52, %v745_v49  ;;  %v780_v56 = vadd.f32 %v779_v46, %v746_v2 }
 0x156   : > { %v817_v59 = vadd.f32 %v816_v3, %v747_v54  ;;  %v781_v7 = vadd.f32 %v780_v56, %v748_v6 }
 0x158   : > { %v782_v30 = vrot.slane %v781_v7, 4  ;;  %v818_v61 = vadd.f32 %v817_v59, %v749_v53 }
 0x15a   : > { %v783_v8 = vadd.f32 %v782_v30, %v781_v7  ;;  %v819_v1 = vrot.slane %v818_v61, 4 }
 0x15c   : > { %v784_v12 = vrot.slane %v783_v8, 2  ;;  %v820_v13 = vadd.f32 %v819_v1, %v818_v61 }
 0x15e   : > { %v785_v32 = vadd.f32 %v784_v12, %v783_v8  ;;  %v821_v5 = vrot.slane %v820_v13, 2 }
 0x160   : > { %v786_v14 = vrot.slane %v785_v32, 1  ;;  %v822_v15 = vadd.f32 %v821_v5, %v820_v13 }
 0x162   : > { %v823_v11 = vrot.slane %v822_v15, 1  ;;  %v787_v34 = vadd.f32 %v786_v14, %v785_v32 }
 0x164   : > { %v824_v19 = vadd.f32 %v823_v11, %v822_v15 }
 0x166   : > { %v827_v20 = vcombine.low %v787_v34, %v824_v19 }
 0x168   : > { %v834_v0 = vrot.slane %v827_v20, %v833_v17 }
 0x16a   : > { %v841_v21 = vrot.slane %v834_v0, %v833_v17  ;;  %852 = sbr.rel (%p1174_p1) target bundleno = 600 (0x258), region = 48 }
 0x16c   : > { %v843_v22 = vadd.f32 %v841_v21, %v750_v35 }
 0x16e   : > { %848 = vst.msk [vmem:[#allocation2] sm:$0x3] %vm846_vm2, %v843_v22 }
 0x16f   : > { %v1331_v36 = vld [vmem:[%s1903_s3 + $0x78] sm:$0xff]   ;;  %v1333_v38 = vld [vmem:[%s1903_s3 + $0x70] sm:$0xff]   ;;  %v1335_v4 = vld [vmem:[%s1903_s3 + $0x68] sm:$0xff]  }
 0x170   : > { %v1332_v9 = vld [vmem:[%s1903_s3 + $0x38] sm:$0xff]   ;;  %1194 = vmatprep.subr.bf16.mxu0 %v1331_v36  ;;  %v1334_v45 = vld [vmem:[%s1903_s3 + $0x30] sm:$0xff]   ;;  %v1336_v23 = vld [vmem:[%s1903_s3 + $0x28] sm:$0xff]  }
 0x171   : > { %1195 = vmatpush3.bf16.msra.mxu0 %v1332_v9  ;;  %v1337_v25 = vld [vmem:[%s1903_s3 + $0x60] sm:$0xff]   ;;  %v1339_v27 = vld [vmem:[%s1903_s3 + $0x58] sm:$0xff]   ;;  %v1341_v48 = vld [vmem:[%s1903_s3 + $0x50] sm:$0xff]  }
 0x172   : > { %1196 = vmatprep.subr.bf16.mxu0 %v1333_v38  ;;  %v1338_v26 = vld [vmem:[%s1903_s3 + $0x20] sm:$0xff]   ;;  %v1340_v40 = vld [vmem:[%s1903_s3 + $0x18] sm:$0xff]   ;;  %v1342_v60 = vld [vmem:[%s1903_s3 + $0x10] sm:$0xff]  }
 0x173   : > { %v1343_v31 = vld [vmem:[%s1903_s3 + $0x48] sm:$0xff]   ;;  %v1345_v44 = vld [vmem:[%s1903_s3 + $0x40] sm:$0xff]  }
 0x174   : > { %v1344_v37 = vld [vmem:[%s1903_s3 + $0x8] sm:$0xff]   ;;  %v1346_v39 = vld [vmem:[%s1903_s3] sm:$0xff]  }
 0x175   : > { %1197 = vmatpush3.bf16.msra.mxu0 %v1334_v45  ;;  %v853_v42 = vld [vmem:[#allocation2] sm:$0x3] }
 0x176   : > { %1198 = vmatprep.subr.bf16.mxu0 %v1335_v4  ;;  %v854_v29 = vmul.f32 0.0009765625, %v853_v42  ;;  %v900_v24 = vld [vmem:[%s1904_s4] sm:$0x1] }
 0x178   : > { %v863_v16 = vrot.slane %v854_v29, %v310_v57  ;;  %v859_v57 = vrot.slane %v854_v29, %v306_v55 }
 0x179   : > { %1199 = vmatpush3.bf16.msra.mxu0 %v1336_v23 }
 0x17a   : > { %1200 = vmatprep.subr.bf16.mxu0 %v1337_v25  ;;  %v867_v28 = vpack.c.bf16 %v863_v16, %v863_v16  ;;  %v866_v47 = vpack.c.bf16 %v859_v57, %v859_v57 }
 0x17c   : > { %1029 = vmatprep.mubr.bf16.mxu0 %v867_v28 }
 0x17d   : > { %1201 = vmatpush3.bf16.msra.mxu0 %v1338_v26 }
 0x17e   : > { %1202 = vmatprep.subr.bf16.mxu0 %v1339_v27 }
 0x181   : > { %1203 = vmatpush3.bf16.msra.mxu0 %v1340_v40 }
 0x182   : > { %1204 = vmatprep.subr.bf16.mxu0 %v1341_v48 }
 0x185   : > { %1205 = vmatpush3.bf16.msra.mxu0 %v1342_v60 }
 0x186   : > { %1206 = vmatprep.subr.bf16.mxu0 %v1343_v31 }
 0x189   : > { %1207 = vmatpush3.bf16.msra.mxu0 %v1344_v37 }
 0x18a   : > { %1208 = vmatprep.subr.bf16.mxu0 %v1345_v44 }
 0x18d   : > { %1209 = vmatpush3.bf16.msra.mxu0 %v1346_v39 }
 0x190   : > { %1030 = vmatmul.mubr.bf16.vlgmr.msra.gmra.mxu0 %v866_v47 }
 0x250   : > { %v1210_v51 = vpop.f32.mrf.mxu0 }
 0x252   : > { %v1211_v41 = vpop.f32.mrf.mxu0 }
 0x253   : > { %v1212_v18 = vadd.f32 %v1211_v41, %v1210_v51 }
 0x254   : > { %v1213_v10 = vpop.f32.mrf.mxu0 }
 0x255   : > { %v1032_v43 = vadd.f32 %v1212_v18, %v900_v24 }
 0x256   : > { %v1214_v50 = vpop.f32.mrf.mxu0 }
 0x257   : > { %1037 = vst [vmem:[%s1555_s27] sm:$0x1] %v1032_v43 }
 0x258 PF: > { %s1191_s13 = sshll.u32 %s1427_s22, 4  ;;  %s1051_s17 = sshll.u32 %s1555_s27, 4  ;;  %s1052_s17 = int_to_ptr.vmem [resolvable:$true] %s1051_s17 }
 0x259   : > { %s1049_s16 = scalar_lea.hbm %s1905_s5, %s1191_s13  ;;  %s1039_s7 = scalar_lea.sflag [#allocation4], %s238_s10 }
 0x25a   : > { %s1347_s8 = scalar_lea.vmem %s1052_s17, 16  ;;  %s1444_s21 = smov [#allocation3]  }
 0x25b   : > { %p1348_p2 = scmp.ne.s32.totalorder %s1052_s17, %s1347_s8  ;;  %s1351_s26 = sshll.u32 %s1444_s21, 4  ;;  %s1352_s26 = int_to_ptr.vmem [resolvable:$false] %s1351_s26 }
 0x25c   : > { %s1353_s11 = scalar_lea.vmem %s1352_s26, 32  ;;  %p1354_p6 = scmp.lt.s32.totalorder %s1052_s17, %s1352_s26 }
 0x25d   : > { %p1349_p4 = pnand %p1348_p2, %p1524_p3  ;;  %p1355_p7 = scmp.lt.s32.totalorder %s1353_s11, %s1347_s8 }
 0x25f   : > { %p1350_p5 = pneg %p1349_p4  ;;  %p1356_p8 = por %p1355_p7, %p1354_p6 }
 0x261   : > { %p1357_p10 = pnand %p1356_p8, %p1350_p5 }
 0x263   : > { %1360 = shalt.err (!%p1357_p10)
}
 0x264   : > { %s1361_s22 = scalar_lea.hbm %s1049_s16, 16  ;;  %s1365_s12 = scalar_lea.hbm %s1905_s5, 32 }
 0x265   : > { %p1362_p11 = scmp.ne.s32.totalorder %s1049_s16, %s1361_s22  ;;  %p1366_p0 = scmp.lt.s32.totalorder %s1049_s16, %s1905_s5 }
 0x266   : > { %p1367_p1 = scmp.lt.s32.totalorder %s1365_s12, %s1361_s22 }
 0x267   : > { %p1363_p12 = pnand %p1362_p11, %p1524_p3 }
 0x268   : > { %p1368_p2 = por %p1367_p1, %p1366_p0 }
 0x269   : > { %p1364_p13 = pneg %p1363_p12 }
 0x26b   : > { %p1369_p4 = pnand %p1368_p2, %p1364_p13 }
 0x26d   : > { %1372 = shalt.err (!%p1369_p4)
}
 0x26e   : > { %1226 = dma.vmem_to_hbm [thread:$0]  (%p1524_p3), %s1052_s17, 16, %s1049_s16, %s1039_s7  }
 0x26f PF: > { %p1232_p5 = scmp.ge.s32.totalorder %s1439_s25, 2  ;;  %s1063_s15 = sand.u32 1, %s1411_s18  }
 0x270   : > { %s1064_s8 = scalar_lea.sflag [#allocation4], %s1063_s15 }
 0x271   : > { %p1229_p6 = pnand %p1232_p5, %p1534_p9 }
 0x273   : > { %p1230_p7 = pneg %p1229_p6 }
 0x275   : > { %1406 = dma.done.wait (%p1230_p7), %s1064_s8, 16  }
 0x276   : > { %1408 = vsyncadd (%p1230_p7), %s1064_s8, 4294967280  ;;  %s18_s25 = sadd.s32 1, %s1439_s25   ;;  %s1908_s18 = smov %s1415_s19 }
 0x277   : > { %p15_p8 = scmp.ge.s32.totalorder %s18_s25, 10   ;;  %s1909_s19 = smov %s1419_s20 }
 0x278   : > { %s1910_s20 = smov %s1542_s9  ;;  %s1911_s21 = smov %s1431_s23 }
 0x279   : > { %s1912_s22 = smov %s1435_s24  ;;  %s1913_s23 = smov %s1916_s28 }
 0x27a   : > { %s1914_s24 = smov %s1920_s29  ;;  %17 = sbr.rel (!%p15_p8) target bundleno = 5 (0x5), region = 83 }
 0x27f   :  { %1068 = vsyncpa [#allocation4], 1 }
 0x280   :  { %1070 = vsyncpa [#allocation4 + $0x1], 1 }

</bundles_post_ra>
